<compile_context>
chip_gen: v6e
topology: v6e:2x2x1
jax: 0.10.0
libtpu: 0.0.40
codegen_flags: <defaults>
</compile_context>

<pallas_src>
import jax
import jax.numpy as jnp
from jax import lax
from jax.experimental import pallas as pl
from jax.experimental.pallas import tpu as pltpu


_MAX_TILE_R = 2048   # rows of 128 lanes per grid step: 262144 points, 3 MiB in + 1 MiB out
_CHUNK_R = 128       # inner sub-chunk rows: each live (chunk,128) f32 value = 16 vregs


def _round_up(x, m):
    return ((x + m - 1) // m) * m


def _pick_geometry(r8):
    """r8 = number of 128-lane rows (multiple of 8).  Returns (tile_r, steps)."""
    if r8 <= 16:
        return max(r8, 8), 1                      # tiny input: one small step
    steps = max(2, -(-r8 // _MAX_TILE_R))         # >= 2 steps for the v7x megacore
    if steps % 2:
        steps += 1                                # balanced work across 2 TensorCores
    tile_r = _round_up(-(-r8 // steps), 8)        # <= _MAX_TILE_R, pads <= ~8 rows/step
    return tile_r, steps


def padded_rows(n_points):
    """Row count R such that coordinate-major (3, R, 128) input hits the zero-copy
    fast path in box_sdf_planar (R * 128 >= n_points)."""
    r8 = _round_up(_round_up(max(n_points, 1), 128) // 128, 8)
    tile_r, steps = _pick_geometry(r8)
    return tile_r * steps


def _make_kernel(tile_r, chunk_r):
    """Build the kernel for a static tile size; inner loop bounds live vreg ranges."""
    n_full = tile_r // chunk_r
    rem = tile_r - n_full * chunk_r               # static remainder (multiple of 8)

    def kernel(c_ref, s_ref, p_ref, o_ref):
        # c_ref, s_ref: SMEM (3,) f32 (center, half side-lengths)
        # p_ref: VMEM (3, tile_r, 128) f32 ; o_ref: VMEM (tile_r, 128) f32
        cx, cy, cz = c_ref[0], c_ref[1], c_ref[2]
        sx, sy, sz = s_ref[0], s_ref[1], s_ref[2]

        def compute(r0, rows):
            rs = pl.ds(r0, rows)
            # Accumulator style: at most ~3-4 live (rows,128) planes at any point.
            d = jnp.abs(p_ref[0, rs, :] - cx) - sx
            m = d
            pd = jnp.maximum(d, 0.0)
            acc = pd * pd
            d = jnp.abs(p_ref[1, rs, :] - cy) - sy
            m = jnp.maximum(m, d)
            pd = jnp.maximum(d, 0.0)
            acc = acc + pd * pd
            d = jnp.abs(p_ref[2, rs, :] - cz) - sz
            m = jnp.maximum(m, d)
            pd = jnp.maximum(d, 0.0)
            acc = acc + pd * pd
            o_ref[rs, :] = jnp.sqrt(acc) + jnp.minimum(m, 0.0)

        if n_full > 0:
            def body(i, carry):
                compute(pl.multiple_of(i * chunk_r, chunk_r), chunk_r)
                return carry
            lax.fori_loop(0, n_full, body, 0)
        if rem > 0:
            compute(n_full * chunk_r, rem)

    return kernel


def _box_sdf_call(pts_3rc, c, s_half, tile_r, steps):
    """pts_3rc: (3, tile_r*steps, 128) f32 coordinate-major.  Returns (tile_r*steps, 128)."""
    r_pad = tile_r * steps
    n_pad = r_pad * 128
    return pl.pallas_call(
        _make_kernel(tile_r, _CHUNK_R),
        out_shape=jax.ShapeDtypeStruct((r_pad, 128), jnp.float32),
        grid_spec=pltpu.PrefetchScalarGridSpec(
            num_scalar_prefetch=0,
            grid=(steps,),
            in_specs=[
                pl.BlockSpec(memory_space=pltpu.MemorySpace.SMEM),       # center
                pl.BlockSpec(memory_space=pltpu.MemorySpace.SMEM),       # half side lengths
                pl.BlockSpec((3, tile_r, 128), lambda i: (0, i, 0)),     # points tile
            ],
            out_specs=pl.BlockSpec((tile_r, 128), lambda i: (i, 0)),
        ),
        compiler_params=pltpu.CompilerParams(
            dimension_semantics=("parallel",)),
        cost_estimate=pl.CostEstimate(
            flops=21 * n_pad, transcendentals=n_pad, bytes_accessed=16 * n_pad),
    )(c, s_half, pts_3rc)


@jax.jit
def box_sdf_planar(points_cmaj, center, side_lengths):
    """Fast path: points already coordinate-major, shape (3, R, 128) with R % 8 == 0
    (use padded_rows(N) for R to avoid any padding copy).  Returns (R', 128) float32
    with R' >= R; rows beyond the real points hold garbage."""
    assert points_cmaj.ndim == 3 and points_cmaj.shape[0] == 3 and points_cmaj.shape[2] == 128
    r = points_cmaj.shape[1]
    tile_r, steps = _pick_geometry(_round_up(r, 8))
    r_pad = tile_r * steps
    pts = points_cmaj.astype(jnp.float32)
    if r_pad != r:
        pts = jnp.pad(pts, ((0, 0), (0, r_pad - r), (0, 0)))
    c = center.astype(jnp.float32).reshape(3)
    s_half = (side_lengths.astype(jnp.float32) / 2.0).reshape(3)
    return _box_sdf_call(pts, c, s_half, tile_r, steps)


@jax.jit
def box_sdf(points, center, side_lengths):
    """Module-compatible interface.  points: (..., 3); center, side_lengths: (3,).
    Returns (N, 1) float32 with N = prod(points.shape[:-1])."""
    pts = points.reshape(-1, 3).astype(jnp.float32)            # (N, 3)
    n = pts.shape[0]

    r8 = _round_up(_round_up(max(n, 1), 128) // 128, 8)
    tile_r, steps = _pick_geometry(r8)
    r_pad = tile_r * steps
    n_pad = r_pad * 128

    # TODO(synk): this pad+transpose is the dominant HBM cost for big N; producers
    # that can emit coordinate-major (3, padded_rows(N), 128) should call box_sdf_planar.
    pts_p = jnp.pad(pts, ((0, n_pad - n), (0, 0)))
    pts_3rc = jnp.transpose(pts_p.reshape(r_pad, 128, 3), (2, 0, 1))

    c = center.astype(jnp.float32).reshape(3)
    s_half = (side_lengths.astype(jnp.float32) / 2.0).reshape(3)

    out = _box_sdf_call(pts_3rc, c, s_half, tile_r, steps)     # (r_pad, 128)
    out = out.reshape(n_pad, 1)                                # free contiguous reshape
    if n == n_pad:
        return out                                             # no epilogue copy
    return out[:n]                                             # copy only when padded


def box_sdf_ref(points, center, side_lengths):
    pts = points.reshape(-1, 3).astype(jnp.float32)
    diff = jnp.abs(pts - center[None, :]) - side_lengths[None, :] / 2.0
    outside = jnp.linalg.norm(jnp.maximum(diff, 0.0), axis=-1)
    inside = jnp.minimum(jnp.max(diff, axis=-1), 0.0)
    return (outside + inside)[:, None]


if __name__ == "__main__":
    key = jax.random.PRNGKey(0)

    # Deterministic "cfg" parameters (module __init__ stores (1,3) params).
    center = jnp.array([0.1, -0.2, 0.3], dtype=jnp.float32)
    side_lengths = jnp.array([1.0, 0.5, 2.0], dtype=jnp.float32)

    k1, k2, k3 = jax.random.split(key, 3)

    # Small cloud: (2, 128, 3) -> N = 256 points (single tiny tile).
    points_small = jax.random.normal(k1, (2, 128, 3), dtype=jnp.float32) * 2.0
    out_small = jax.block_until_ready(box_sdf(points_small, center, side_lengths))
    ref_small = box_sdf_ref(points_small, center, side_lengths)
    assert out_small.shape == (256, 1), out_small.shape
    assert jnp.allclose(out_small, ref_small, atol=1e-5, rtol=1e-5), \
        float(jnp.max(jnp.abs(out_small - ref_small)))

    # Medium cloud: N = 37000 -> 2 grid steps, inner-chunk remainder, padded tail.
    points_med = jax.random.normal(k2, (37, 1000, 3), dtype=jnp.float32) * 3.0
    out_med = jax.block_until_ready(box_sdf(points_med, center, side_lengths))
    ref_med = box_sdf_ref(points_med, center, side_lengths)
    assert out_med.shape == (37000, 1), out_med.shape
    assert jnp.allclose(out_med, ref_med, atol=1e-5, rtol=1e-5), \
        float(jnp.max(jnp.abs(out_med - ref_med)))

    # Coordinate-major fast path: no layout prologue/epilogue copies.
    n_planar = 4096
    r_planar = padded_rows(n_planar)
    pts_cmaj = jax.random.normal(k3, (3, r_planar, 128), dtype=jnp.float32) * 2.0
    out_planar = jax.block_until_ready(box_sdf_planar(pts_cmaj, center, side_lengths))
    assert out_planar.shape == (r_planar, 128), out_planar.shape
    pts_nc = jnp.transpose(pts_cmaj, (1, 2, 0)).reshape(-1, 3)
    ref_planar = box_sdf_ref(pts_nc, center, side_lengths)
    assert jnp.allclose(out_planar.reshape(-1, 1), ref_planar, atol=1e-5, rtol=1e-5), \
        float(jnp.max(jnp.abs(out_planar.reshape(-1, 1) - ref_planar)))

    print("KERNEL_OK")
</pallas_src>

<mosaic_0001>
module attributes {stable_mosaic.version = 11 : i64} {
  func.func @kernel(%arg0: i32, %arg1: memref<3xf32, #tpu.memory_space<smem>>, %arg2: memref<3xf32, #tpu.memory_space<smem>>, %arg3: memref<3x8x128xf32, #tpu.memory_space<vmem>>, %arg4: memref<8x128xf32, #tpu.memory_space<vmem>>) attributes {dimension_semantics = [#tpu.dimension_semantics<parallel>], iteration_bounds = array<i64: 1>, scalar_prefetch = 0 : i64, scratch_operands = 0 : i64, tpu.core_type = #tpu.core_type<tc>, window_params = [{transform_indices = @transform_0, window_bounds = array<i64: 3>}, {transform_indices = @transform_1, window_bounds = array<i64: 3>}, {transform_indices = @transform_2, window_bounds = array<i64: 3, 8, 128>}, {transform_indices = @transform_3, window_bounds = array<i64: 8, 128>}]} {
    %c0 = arith.constant 0 : index
    %0 = memref.load %arg1[%c0] : memref<3xf32, #tpu.memory_space<smem>>
    %c1 = arith.constant 1 : index
    %1 = memref.load %arg1[%c1] : memref<3xf32, #tpu.memory_space<smem>>
    %c2 = arith.constant 2 : index
    %2 = memref.load %arg1[%c2] : memref<3xf32, #tpu.memory_space<smem>>
    %c0_0 = arith.constant 0 : index
    %3 = memref.load %arg2[%c0_0] : memref<3xf32, #tpu.memory_space<smem>>
    %c1_1 = arith.constant 1 : index
    %4 = memref.load %arg2[%c1_1] : memref<3xf32, #tpu.memory_space<smem>>
    %c2_2 = arith.constant 2 : index
    %5 = memref.load %arg2[%c2_2] : memref<3xf32, #tpu.memory_space<smem>>
    %c0_3 = arith.constant 0 : index
    %c0_4 = arith.constant 0 : index
    %c0_5 = arith.constant 0 : index
    %6 = vector.load %arg3[%c0_3, %c0_4, %c0_5] : memref<3x8x128xf32, #tpu.memory_space<vmem>>, vector<1x8x128xf32>
    %7 = vector.shape_cast %6 : vector<1x8x128xf32> to vector<8x128xf32>
    %8 = vector.broadcast %0 : f32 to vector<8x128xf32>
    %9 = arith.subf %7, %8 : vector<8x128xf32>
    %10 = math.absf %9 : vector<8x128xf32>
    %11 = vector.broadcast %3 : f32 to vector<8x128xf32>
    %12 = arith.subf %10, %11 : vector<8x128xf32>
    %cst = arith.constant 0.000000e+00 : f32
    %13 = vector.broadcast %cst : f32 to vector<8x128xf32>
    %14 = arith.maximumf %12, %13 : vector<8x128xf32>
    %15 = arith.mulf %14, %14 : vector<8x128xf32>
    %c1_6 = arith.constant 1 : index
    %c0_7 = arith.constant 0 : index
    %c0_8 = arith.constant 0 : index
    %16 = vector.load %arg3[%c1_6, %c0_7, %c0_8] : memref<3x8x128xf32, #tpu.memory_space<vmem>>, vector<1x8x128xf32>
    %17 = vector.shape_cast %16 : vector<1x8x128xf32> to vector<8x128xf32>
    %18 = vector.broadcast %1 : f32 to vector<8x128xf32>
    %19 = arith.subf %17, %18 : vector<8x128xf32>
    %20 = math.absf %19 : vector<8x128xf32>
    %21 = vector.broadcast %4 : f32 to vector<8x128xf32>
    %22 = arith.subf %20, %21 : vector<8x128xf32>
    %23 = arith.maximumf %12, %22 : vector<8x128xf32>
    %cst_9 = arith.constant 0.000000e+00 : f32
    %24 = vector.broadcast %cst_9 : f32 to vector<8x128xf32>
    %25 = arith.maximumf %22, %24 : vector<8x128xf32>
    %26 = arith.mulf %25, %25 : vector<8x128xf32>
    %27 = arith.addf %15, %26 : vector<8x128xf32>
    %c2_10 = arith.constant 2 : index
    %c0_11 = arith.constant 0 : index
    %c0_12 = arith.constant 0 : index
    %28 = vector.load %arg3[%c2_10, %c0_11, %c0_12] : memref<3x8x128xf32, #tpu.memory_space<vmem>>, vector<1x8x128xf32>
    %29 = vector.shape_cast %28 : vector<1x8x128xf32> to vector<8x128xf32>
    %30 = vector.broadcast %2 : f32 to vector<8x128xf32>
    %31 = arith.subf %29, %30 : vector<8x128xf32>
    %32 = math.absf %31 : vector<8x128xf32>
    %33 = vector.broadcast %5 : f32 to vector<8x128xf32>
    %34 = arith.subf %32, %33 : vector<8x128xf32>
    %35 = arith.maximumf %23, %34 : vector<8x128xf32>
    %cst_13 = arith.constant 0.000000e+00 : f32
    %36 = vector.broadcast %cst_13 : f32 to vector<8x128xf32>
    %37 = arith.maximumf %34, %36 : vector<8x128xf32>
    %38 = arith.mulf %37, %37 : vector<8x128xf32>
    %39 = arith.addf %27, %38 : vector<8x128xf32>
    %40 = math.sqrt %39 : vector<8x128xf32>
    %cst_14 = arith.constant 0.000000e+00 : f32
    %41 = vector.broadcast %cst_14 : f32 to vector<8x128xf32>
    %42 = arith.minimumf %35, %41 : vector<8x128xf32>
    %43 = arith.addf %40, %42 : vector<8x128xf32>
    %c0_15 = arith.constant 0 : index
    %c0_16 = arith.constant 0 : index
    %44 = vector.load %arg4[%c0_15, %c0_16] : memref<8x128xf32, #tpu.memory_space<vmem>>, vector<8x128xf32>
    tpu.vector_store %arg4[%c0_15, %c0_16], %43 {strides = array<i32>} : memref<8x128xf32, #tpu.memory_space<vmem>>, vector<8x128xf32>,
    return
  }
  func.func @transform_0(%arg0: i32) -> i32 {
    %c0_i32 = arith.constant 0 : i32
    %c0_i32_0 = arith.constant 0 : i32
    return %c0_i32 : i32
  }
  func.func @transform_1(%arg0: i32) -> i32 {
    %c0_i32 = arith.constant 0 : i32
    %c0_i32_0 = arith.constant 0 : i32
    return %c0_i32 : i32
  }
  func.func @transform_2(%arg0: i32) -> (i32, i32, i32) {
    %c0_i32 = arith.constant 0 : i32
    %c0_i32_0 = arith.constant 0 : i32
    %c0_i32_1 = arith.constant 0 : i32
    return %c0_i32, %arg0, %c0_i32_0 : i32, i32, i32
  }
  func.func @transform_3(%arg0: i32) -> (i32, i32) {
    %c0_i32 = arith.constant 0 : i32
    %c0_i32_0 = arith.constant 0 : i32
    return %arg0, %c0_i32 : i32, i32
  }
}

</mosaic_0001>

<bundles_post_ra>
// kernel: box_sdf.1
= control target key start
LH: loop header
LB: loop body
LE: loop exit
PB: predicated region body
PF: predicated region fallthrough
CT: control target
= control target key end

     0   :  { %8 = vsyncpa [#allocation3], 0  ;;  %s169_s0 = inlined_call_operand.vmem [shape: f32[3], index: 0, kind: input, shape index: {}]   ;;  %s170_s1 = inlined_call_operand.vmem [shape: f32[3], index: 1, kind: input, shape index: {}]   ;;  %s171_s2 = inlined_call_operand.vmem [shape: f32[3,8,128], index: 2, kind: input, shape index: {}]   ;;  %s172_s3 = inlined_call_operand.vmem [shape: f32[8,128], index: 3, kind: output, shape index: {}]  }
   0x1   :  { %s16_s14 = sshll.u32 %s169_s0, 4  ;;  %s17_s14 = int_to_ptr.vmem [resolvable:$true] %s16_s14 }
   0x2   :  { %9 = vsyncpa [#allocation5], 0  ;;  %s26_s17 = sshll.u32 %s170_s1, 4  ;;  %s101_s18 = scalar_lea.vmem %s17_s14, 16  ;;  %s27_s17 = int_to_ptr.vmem [resolvable:$true] %s26_s17 }
   0x3   :  { %p102_p0 = scmp.ne.s32.totalorder %s17_s14, %s101_s18  ;;  %p106_p1 = scmp.lt.s32.totalorder %s17_s14, %s17_s14 }
   0x4   :  { %p107_p2 = scmp.lt.s32.totalorder %s101_s18, %s101_s18 }
   0x6   :  { %p108_p3 = por %p107_p2, %p106_p1 }
   0x8   :  { %p109_p4 = pnand %p108_p3, %p102_p0 }
   0xa   :  { %112 = shalt.err (!%p109_p4)
}
   0xb   :  { %s129_s19 = smov [#allocation2]   ;;  %s113_s20 = scalar_lea.vmem %s27_s17, 16 }
   0xc   :  { %19 = dma.vmem_to_smem %s17_s14, 16, %s129_s19, [#allocation3]  }
   0xd   :  { %p114_p5 = scmp.ne.s32.totalorder %s27_s17, %s113_s20  ;;  %p118_p6 = scmp.lt.s32.totalorder %s27_s17, %s27_s17 }
   0xe   :  { %p119_p7 = scmp.lt.s32.totalorder %s113_s20, %s113_s20 }
  0x10   :  { %p120_p8 = por %p119_p7, %p118_p6 }
  0x12   :  { %p121_p9 = pnand %p120_p8, %p114_p5 }
  0x14   :  { %124 = shalt.err (!%p121_p9)
}
  0x15   :  { %s130_s0 = smov [#allocation4]  }
  0x16   :  { %29 = dma.vmem_to_smem %s27_s17, 16, %s130_s0, [#allocation5]  }
  0x17   :  { %125 = dma.done.wait [#allocation3], 16  }
  0x18   :  { %126 = vsyncadd [#allocation3], 4294967280 }
  0x19   :  { %127 = dma.done.wait [#allocation5], 16  }
  0x1a   :  { %128 = vsyncadd [#allocation5], 4294967280 }
  0x1b   :  { %38 = sfence }
  0x1c   :  { %s39_s1 = sld [smem:[#allocation2]]  ;;  %v45_v0 = vld [vmem:[%s171_s2] sm:$0xff]  ;;  %v95_v1 = vld [vmem:[%s171_s2 + $0x8] sm:$0xff]  ;;  %v96_v3 = vld [vmem:[%s171_s2 + $0x10] sm:$0xff] }
  0x1d   :  { %s91_s21 = sld [smem:[#allocation2 + $0x1]] }
  0x1e   :  { %s92_s22 = sld [smem:[#allocation2 + $0x2]] }
  0x1f   :  { %s42_s23 = sld [smem:[#allocation4]] }
  0x20   :  { %s93_s24 = sld [smem:[#allocation4 + $0x1]] }
  0x21   :  { %s94_s27 = sld [smem:[#allocation4 + $0x2]] }
  0x22   :  { %v46_v2 = vstv %s39_s1 }
  0x23   :  { %v47_v4 = vsub.f32 %v45_v0, %v46_v2  ;;  %v55_v5 = vstv %s91_s21 }
  0x24   :  { %v56_v6 = vsub.f32 %v95_v1, %v55_v5  ;;  %v66_v7 = vstv %s92_s22 }
  0x25   :  { %v48_v8 = vand.u32 2147483647, %v47_v4  ;;  %v49_v9 = vstv %s42_s23  ;;  %v67_v10 = vsub.f32 %v96_v3, %v66_v7 }
  0x26   :  { %v57_v11 = vand.u32 2147483647, %v56_v6  ;;  %v58_v12 = vstv %s93_s24 }
  0x27   :  { %v50_v13 = vsub.f32 %v48_v8, %v49_v9  ;;  %v68_v14 = vand.u32 2147483647, %v67_v10  ;;  %v69_v15 = vstv %s94_s27 }
  0x28   :  { %v59_v16 = vsub.f32 %v57_v11, %v58_v12 }
  0x29   :  { %v51_v17 = vmax.f32 %v50_v13, 0.0  ;;  %v70_v18 = vsub.f32 %v68_v14, %v69_v15 }
  0x2a   :  { %v61_v19 = vmax.f32 %v59_v16, 0.0  ;;  %v60_v26 = vmax.f32 %v50_v13, %v59_v16 }
  0x2b   :  { %v52_v20 = vmul.f32 %v51_v17, %v51_v17  ;;  %v72_v21 = vmax.f32 %v70_v18, 0.0 }
  0x2c   :  { %v62_v22 = vmul.f32 %v61_v19, %v61_v19  ;;  %v71_v27 = vmax.f32 %v60_v26, %v70_v18 }
  0x2d   :  { %v73_v23 = vmul.f32 %v72_v21, %v72_v21 }
  0x2e   :  { %v63_v24 = vadd.f32 %v62_v22, %v52_v20  ;;  %v82_v31 = vmin.f32 %v71_v27, 0.0 }
  0x30   :  { %v74_v25 = vadd.f32 %v73_v23, %v63_v24 }
  0x32   :  { %99 = vrsqrt.f32 %v74_v25  ;;  %vm77_vm0 = vcmp.eq.f32.partialorder %v74_v25, inf  ;;  %v80_v29 = vand.u32 2147483648, %v74_v25  ;;  %vm79_vm1 = vcmp.eq.f32.partialorder %v74_v25, 0.0 }
  0x3f   :  { %v100_v28 = vpop.eup %99 }
  0x40   :  { %v76_v30 = vmul.f32 %v100_v28, %v74_v25 }
  0x42   :  { %v78_v32 = vsel %vm77_vm0, %v74_v25, %v76_v30 }
  0x43   :  { %v81_v33 = vsel %vm79_vm1, %v80_v29, %v78_v32 }
  0x44   :  { %v83_v34 = vadd.f32 %v82_v31, %v81_v33 }
  0x46   :  { %84 = vst [vmem:[%s172_s3] sm:$0xff] %v83_v34 }
  0x47   :  { %89 = vsyncpa [#allocation3], 1 }
  0x48   :  { %90 = vsyncpa [#allocation5], 1 }

</bundles_post_ra>
